<compile_context>
chip_gen: v5e
topology: v5e:2x2
jax: 0.10.0
libtpu: 0.0.40
codegen_flags: <defaults>
</compile_context>

<pallas_src>
from functools import partial

import jax
import jax.numpy as jnp
from jax.experimental import pallas as pl
from jax.experimental.pallas import tpu as pltpu


def _vmem_capacity_bytes():
    """Physical VMEM per core, generation-aware, with safe fallbacks."""
    try:
        cap = int(pltpu.get_tpu_info().vmem_capacity_bytes)
        if cap > 0:
            return cap
    except Exception:
        pass
    try:
        if "v7" in jax.devices()[0].device_kind.lower():
            return 64 * 1024 * 1024
    except Exception:
        pass
    return 128 * 1024 * 1024


def depthconv1d_kernel(alpha_ref,                 # SMEM (2,): [alpha1, alpha2]
                       x_ref,                      # (1, C_in, Tp)
                       w1_ref,                     # (H, C_in)   mxu_dtype
                       dw_ref,                     # (H, K)      f32
                       pch_ref,                    # (H, 4): [b1, g1w, g1b, db]
                       wres_ref,                   # (C_in, H)   mxu_dtype, g2w folded
                       cch_ref,                    # (C_in, 2): [bres_f, rowsum(wres_f)]
                       out_ref,                    # (1, C_in, Tp)
                       *, kernel, dilation, padding, eps, t_true, mxu_dtype):
    H = w1_ref.shape[0]
    Tp = x_ref.shape[-1]
    inv_n = 1.0 / float(H * t_true)

    b1  = pch_ref[:, 0:1]
    g1w = pch_ref[:, 1:2]
    g1b = pch_ref[:, 2:3]
    db  = pch_ref[:, 3:4]
    a1 = alpha_ref[0]
    a2 = alpha_ref[1]

    masked = (t_true != Tp)                        # static Python bool
    if masked:
        mask = jax.lax.broadcasted_iota(jnp.int32, (1, Tp), 1) < t_true

    # ---- 1x1 conv (MXU, f32 accumulate) + bias fused into the PReLU pass ----
    x = x_ref[0].astype(mxu_dtype)                 # no-op when dtypes match
    h = jnp.dot(w1_ref[...], x, preferred_element_type=jnp.float32) + b1
    h = jnp.where(h > 0, h, a1 * h)                # PReLU 1

    # ---- mask the tail ONCE; reuse for GN1 stats (masked sums) ----
    if masked:
        h = jnp.where(mask, h, 0.0)

    # GroupNorm(1, H) #1: single-pass stats (f32) + fused per-channel FMA.
    # NOTE: E[x^2]-E[x]^2 in f32 is adequate here (GN whitens, |mean|~std);
    # clamp guards against tiny negative cancellation.
    m1 = jnp.sum(h) * inv_n
    q1 = jnp.sum(h * h) * inv_n
    var1 = jnp.maximum(q1 - m1 * m1, 0.0)
    r1 = jax.lax.rsqrt(var1 + eps)
    scale1 = g1w * r1                              # (H, 1)
    shift1 = g1b - m1 * scale1                     # (H, 1)
    hn = h * scale1 + shift1                       # single FMA pass over (H, Tp)
    if masked:
        # Tail must be exactly zero: the circular rolls below rely on it as the
        # depthwise conv's zero padding (wrapper guarantees Tp - T >= max|off|).
        hn = jnp.where(mask, hn, 0.0)

    # ---- depthwise conv (groups == H) via circular rolls into the zero tail ----
    acc = None
    for k in range(kernel):                        # small static kernel size
        off = k * dilation - padding
        tap = dw_ref[:, k:k + 1]                   # (H, 1)
        src = hn if off == 0 else pltpu.roll(hn, shift=(-off) % Tp, axis=1)
        term = tap * src
        acc = (term + db) if acc is None else (acc + term)

    # ---- PReLU 2, then mask ONCE; reuse for GN2 stats and the res_out matmul ----
    acc = jnp.where(acc > 0, acc, a2 * acc)
    if masked:
        acc = jnp.where(mask, acc, 0.0)

    m2 = jnp.sum(acc) * inv_n
    q2 = jnp.sum(acc * acc) * inv_n
    var2 = jnp.maximum(q2 - m2 * m2, 0.0)
    r2 = jax.lax.rsqrt(var2 + eps)

    # ---- res_out 1x1 (GN2 affine folded into wres in the wrapper); the GN2
    #      normalise is applied post-matmul on the smaller (C_in, Tp) slab:
    #      W@(s*(a-m)) = s*(W@a) - s*m*rowsum(W)
    bres = cch_ref[:, 0:1]                         # bres + wres @ g2b (folded)
    wrow = cch_ref[:, 1:2]                         # rowsum of folded wres
    res = jnp.dot(wres_ref[...], acc.astype(mxu_dtype),
                  preferred_element_type=jnp.float32)
    out = res * r2 + (bres - (m2 * r2) * wrow)
    out_ref[0] = out.astype(out_ref.dtype)


def depthconv1d(x, params, *, kernel, dilation, padding, eps=1e-8,
                mxu_dtype=jnp.bfloat16):
    B, C_in, T = x.shape
    H = params["w1"].shape[0]
    t_out = T + 2 * padding - dilation * (kernel - 1)
    assert t_out == T, "choose padding so the depthwise conv is length-preserving"

    # Lane-dense time axis: pad T up to a multiple of 128 AND leave at least
    # max(|k*dilation - padding|) zero lanes of tail so circular rolls read the
    # depthwise conv's zero padding (no per-tap boundary masks in the kernel).
    pad_need = max(abs(k * dilation - padding) for k in range(kernel))
    Tp = ((T + pad_need + 127) // 128) * 128
    if Tp != T:
        x = jnp.pad(x, ((0, 0), (0, 0), (0, Tp - T)))
    # TODO(synk): for a TCN stack, pad once outside and keep every DepthConv1d
    # layer on the padded length instead of re-paying the pad's HBM read+write.

    f32 = jnp.float32
    # ---- fold GroupNorm-2 affine into res_out weights (wrapper-side, exact) ----
    g2w = params["g2w"].astype(f32)[:, 0]                       # (H,)
    g2b = params["g2b"].astype(f32)                             # (H, 1)
    wres = params["wres"].astype(f32)                           # (C_in, H)
    wres_f = wres * g2w[None, :]
    bres_f = params["bres"].astype(f32) + wres @ g2b            # (C_in, 1)
    wrow = jnp.sum(wres_f, axis=1, keepdims=True)               # (C_in, 1)

    # ---- pack tiny per-channel vectors into two inputs ----
    pch = jnp.concatenate(
        [params["b1"], params["g1w"], params["g1b"], params["db"]], axis=1
    ).astype(f32)                                               # (H, 4)
    cch = jnp.concatenate([bres_f, wrow], axis=1)               # (C_in, 2)
    alpha = jnp.concatenate(
        [params["alpha1"], params["alpha2"]]).astype(f32)       # (2,) in SMEM

    # MXU operands in bf16 (or f32 if requested); accumulation stays f32.
    w1 = params["w1"].astype(mxu_dtype)
    wres_c = wres_f.astype(mxu_dtype)
    dw = params["dw"].astype(f32)

    # ---- VMEM budget: generation-aware cap + full working-set estimate ----
    elt_x = jnp.dtype(x.dtype).itemsize
    elt_m = jnp.dtype(mxu_dtype).itemsize
    slab_h = H * Tp
    slab_c = C_in * Tp
    est = (2 * 2 * slab_c * elt_x                     # x & out blocks (double-buffered)
           + 6 * slab_h * 4 + slab_h * elt_m          # h/hn/roll/acc temps + mxu cast
           + slab_c * 4 + slab_c * elt_m              # res (f32) + x mxu cast
           + 2 * (H * C_in * elt_m + H * kernel * 4 + H * 4 * 4
                  + C_in * H * elt_m + C_in * 2 * 4))
    cap = _vmem_capacity_bytes()
    vmem_limit = int(min(max(int(est * 1.25), 16 * 1024 * 1024), int(cap * 0.82)))

    kern = partial(depthconv1d_kernel, kernel=kernel, dilation=dilation,
                   padding=padding, eps=eps, t_true=T, mxu_dtype=mxu_dtype)

    def full(shape):
        return pl.BlockSpec(shape, lambda b: (0,) * len(shape))

    out = pl.pallas_call(
        kern,
        out_shape=jax.ShapeDtypeStruct((B, C_in, Tp), x.dtype),
        grid=(B,),
        in_specs=[
            pl.BlockSpec(memory_space=pltpu.MemorySpace.SMEM),     # alpha (2,)
            pl.BlockSpec((1, C_in, Tp), lambda b: (b, 0, 0)),      # x
            full((H, C_in)),                                       # w1 (mxu dtype)
            full((H, kernel)),                                     # dw
            full((H, 4)),                                          # packed per-H params
            full((C_in, H)),                                       # wres (folded, mxu dtype)
            full((C_in, 2)),                                       # packed per-C params
        ],
        out_specs=pl.BlockSpec((1, C_in, Tp), lambda b: (b, 0, 0)),
        compiler_params=pltpu.CompilerParams(
            dimension_semantics=("parallel",),
            vmem_limit_bytes=vmem_limit),
    )(alpha, x, w1, dw, pch, wres_c, cch)

    return out[:, :, :T]


def depthconv1d_ref(x, p, *, kernel, dilation, padding, eps=1e-8):
    """Pure-JAX reference (same semantics as the PyTorch module, f32)."""
    def gn(h, w, b):
        m = jnp.mean(h, axis=(1, 2), keepdims=True)
        v = jnp.mean((h - m) ** 2, axis=(1, 2), keepdims=True)
        return (h - m) / jnp.sqrt(v + eps) * w[None, :, None] + b[None, :, None]

    h = jnp.einsum("hc,bct->bht", p["w1"], x) + p["b1"][None, :, :]
    h = jnp.where(h > 0, h, p["alpha1"][0] * h)
    h = gn(h, p["g1w"][:, 0], p["g1b"][:, 0])
    hp = jnp.pad(h, ((0, 0), (0, 0), (padding, padding)))
    T = x.shape[-1]
    t_out = T + 2 * padding - dilation * (kernel - 1)
    acc = sum(p["dw"][None, :, k:k + 1] * hp[:, :, k * dilation:k * dilation + t_out]
              for k in range(kernel)) + p["db"][None, :, :]
    acc = jnp.where(acc > 0, acc, p["alpha2"][0] * acc)
    acc = gn(acc, p["g2w"][:, 0], p["g2b"][:, 0])
    return jnp.einsum("ch,bht->bct", p["wres"], acc) + p["bres"][None, :, :]


def _make_params(key, C_in, H, K):
    ks = jax.random.split(key, 12)
    return {
        "w1":   0.1 * jax.random.normal(ks[0], (H, C_in), jnp.float32),
        "b1":   0.1 * jax.random.normal(ks[1], (H, 1), jnp.float32),
        "g1w":  1.0 + 0.1 * jax.random.normal(ks[2], (H, 1), jnp.float32),
        "g1b":  0.1 * jax.random.normal(ks[3], (H, 1), jnp.float32),
        "dw":   0.1 * jax.random.normal(ks[4], (H, K), jnp.float32),
        "db":   0.1 * jax.random.normal(ks[5], (H, 1), jnp.float32),
        "g2w":  1.0 + 0.1 * jax.random.normal(ks[6], (H, 1), jnp.float32),
        "g2b":  0.1 * jax.random.normal(ks[7], (H, 1), jnp.float32),
        "wres": 0.1 * jax.random.normal(ks[8], (C_in, H), jnp.float32),
        "bres": 0.1 * jax.random.normal(ks[9], (C_in, 1), jnp.float32),
        "alpha1": jnp.full((1,), 0.25, jnp.float32),   # PReLU default init
        "alpha2": jnp.full((1,), 0.20, jnp.float32),
    }


if __name__ == "__main__":
    key = jax.random.PRNGKey(0)

    def run_case(name, B, C_in, H, T, K, dil, pad, x_dtype, mxu_dtype, atol, rtol):
        params = _make_params(key, C_in, H, K)
        x_f32 = jax.random.normal(jax.random.fold_in(key, hash(name) % 1000),
                                  (B, C_in, T), jnp.float32)
        xk = x_f32.astype(x_dtype)
        out = depthconv1d(xk, params, kernel=K, dilation=dil, padding=pad,
                          mxu_dtype=mxu_dtype)
        out = jax.block_until_ready(out)
        # reference sees the same (rounded) input values the kernel saw
        ref = depthconv1d_ref(xk.astype(jnp.float32), params,
                              kernel=K, dilation=dil, padding=pad)
        assert out.shape == (B, C_in, T), name
        assert jnp.allclose(out.astype(jnp.float32), ref, atol=atol, rtol=rtol), \
            f"mismatch vs pure-JAX reference in case '{name}'"

    # exact-structure check (f32 MXU, tight tolerance)
    run_case("f32-exact", 2, 16, 32, 48, 3, 2, 2, jnp.float32, jnp.float32, 1e-4, 1e-4)
    # bf16 MXU operands (default fast path), f32 accumulation / GN stats
    run_case("bf16-mxu", 2, 16, 32, 48, 3, 2, 2, jnp.float32, jnp.bfloat16, 3e-2, 3e-2)
    # T a multiple of 128, larger dilation (exercises Tp >= T + max|off| padding)
    run_case("T128-dil8", 1, 16, 32, 128, 3, 8, 8, jnp.float32, jnp.float32, 1e-4, 1e-4)
    # bf16 input + bf16 output dtype path
    run_case("bf16-x", 2, 16, 32, 160, 3, 4, 4, jnp.bfloat16, jnp.bfloat16, 5e-2, 5e-2)

    print("KERNEL_OK")
</pallas_src>

<mosaic_0001>
module attributes {stable_mosaic.version = 11 : i64} {
  func.func @depthconv1d_kernel(%arg0: i32, %arg1: memref<2xf32, #tpu.memory_space<smem>>, %arg2: memref<1x16x128xf32, #tpu.memory_space<vmem>>, %arg3: memref<32x16xf32, #tpu.memory_space<vmem>>, %arg4: memref<32x3xf32, #tpu.memory_space<vmem>>, %arg5: memref<32x4xf32, #tpu.memory_space<vmem>>, %arg6: memref<16x32xf32, #tpu.memory_space<vmem>>, %arg7: memref<16x2xf32, #tpu.memory_space<vmem>>, %arg8: memref<1x16x128xf32, #tpu.memory_space<vmem>>) attributes {dimension_semantics = [#tpu.dimension_semantics<parallel>], iteration_bounds = array<i64: 2>, scalar_prefetch = 0 : i64, scratch_operands = 0 : i64, tpu.core_type = #tpu.core_type<tc>, window_params = [{transform_indices = @transform_0, window_bounds = array<i64: 2>}, {transform_indices = @transform_1, window_bounds = array<i64: 1, 16, 128>}, {pipeline_mode = #tpu.pipeline_mode<synchronous>, transform_indices = @transform_2, window_bounds = array<i64: 32, 16>}, {pipeline_mode = #tpu.pipeline_mode<synchronous>, transform_indices = @transform_3, window_bounds = array<i64: 32, 3>}, {pipeline_mode = #tpu.pipeline_mode<synchronous>, transform_indices = @transform_4, window_bounds = array<i64: 32, 4>}, {pipeline_mode = #tpu.pipeline_mode<synchronous>, transform_indices = @transform_5, window_bounds = array<i64: 16, 32>}, {pipeline_mode = #tpu.pipeline_mode<synchronous>, transform_indices = @transform_6, window_bounds = array<i64: 16, 2>}, {transform_indices = @transform_7, window_bounds = array<i64: 1, 16, 128>}]} {
    %c0 = arith.constant 0 : index
    %c0_0 = arith.constant 0 : index
    %0 = vector.load %arg5[%c0, %c0_0] : memref<32x4xf32, #tpu.memory_space<vmem>>, vector<32x1xf32>
    %c0_1 = arith.constant 0 : index
    %c1 = arith.constant 1 : index
    %1 = vector.load %arg5[%c0_1, %c1] : memref<32x4xf32, #tpu.memory_space<vmem>>, vector<32x1xf32>
    %c0_2 = arith.constant 0 : index
    %c2 = arith.constant 2 : index
    %2 = vector.load %arg5[%c0_2, %c2] : memref<32x4xf32, #tpu.memory_space<vmem>>, vector<32x1xf32>
    %c0_3 = arith.constant 0 : index
    %c3 = arith.constant 3 : index
    %3 = vector.load %arg5[%c0_3, %c3] : memref<32x4xf32, #tpu.memory_space<vmem>>, vector<32x1xf32>
    %c0_4 = arith.constant 0 : index
    %4 = memref.load %arg1[%c0_4] : memref<2xf32, #tpu.memory_space<smem>>
    %c1_5 = arith.constant 1 : index
    %5 = memref.load %arg1[%c1_5] : memref<2xf32, #tpu.memory_space<smem>>
    %6 = tpu.iota {dimensions = array<i32: 1>} : vector<1x128xi32>
    %c48_i32 = arith.constant 48 : i32
    %7 = vector.broadcast %c48_i32 : i32 to vector<1x128xi32>
    %8 = arith.cmpi slt, %6, %7 : vector<1x128xi32>
    %c0_6 = arith.constant 0 : index
    %c0_7 = arith.constant 0 : index
    %c0_8 = arith.constant 0 : index
    %9 = vector.load %arg2[%c0_6, %c0_7, %c0_8] : memref<1x16x128xf32, #tpu.memory_space<vmem>>, vector<1x16x128xf32>
    %10 = vector.shape_cast %9 : vector<1x16x128xf32> to vector<16x128xf32>
    %c0_9 = arith.constant 0 : index
    %c0_10 = arith.constant 0 : index
    %11 = vector.load %arg3[%c0_9, %c0_10] : memref<32x16xf32, #tpu.memory_space<vmem>>, vector<32x16xf32>
    %cst = arith.constant dense<0.000000e+00> : vector<32x128xf32>
    %12 = tpu.matmul %11, %10, %cst {dimension_numbers = #tpu.dot_dimension_numbers<[1], [0], [0], [1], [0, 0, 1, 1], [], []>} : vector<32x16xf32>, vector<16x128xf32>, vector<32x128xf32> -> vector<32x128xf32>
    %13 = vector.broadcast %0 : vector<32x1xf32> to vector<32x128xf32>
    %14 = arith.addf %12, %13 : vector<32x128xf32>
    %cst_11 = arith.constant 0.000000e+00 : f32
    %15 = vector.broadcast %cst_11 : f32 to vector<32x128xf32>
    %16 = arith.cmpf ogt, %14, %15 : vector<32x128xf32>
    %17 = vector.broadcast %4 : f32 to vector<32x128xf32>
    %18 = arith.mulf %17, %14 : vector<32x128xf32>
    %19 = arith.select %16, %14, %18 : vector<32x128xi1>, vector<32x128xf32>
    %cst_12 = arith.constant 0.000000e+00 : f32
    %20 = vector.shape_cast %8 : vector<1x128xi1> to vector<1x128xi1>
    %21 = vector.broadcast %20 : vector<1x128xi1> to vector<32x128xi1>
    %22 = vector.broadcast %cst_12 : f32 to vector<32x128xf32>
    %23 = arith.select %21, %19, %22 : vector<32x128xi1>, vector<32x128xf32>
    %24 = vector.shape_cast %23 : vector<32x128xf32> to vector<1x32x128xf32>
    %cst_13 = arith.constant dense<0.000000e+00> : vector<1xf32>
    %25 = vector.multi_reduction <add>, %24, %cst_13 [1, 2] : vector<1x32x128xf32> to vector<1xf32>
    %26 = vector.shape_cast %25 : vector<1xf32> to vector<1x1x1xf32>
    %27 = vector.extract %26[0, 0, 0] : f32 from vector<1x1x1xf32>
    %cst_14 = arith.constant 6.51041686E-4 : f32
    %28 = arith.mulf %27, %cst_14 : f32
    %29 = arith.mulf %23, %23 : vector<32x128xf32>
    %30 = vector.shape_cast %29 : vector<32x128xf32> to vector<1x32x128xf32>
    %cst_15 = arith.constant dense<0.000000e+00> : vector<1xf32>
    %31 = vector.multi_reduction <add>, %30, %cst_15 [1, 2] : vector<1x32x128xf32> to vector<1xf32>
    %32 = vector.shape_cast %31 : vector<1xf32> to vector<1x1x1xf32>
    %33 = vector.extract %32[0, 0, 0] : f32 from vector<1x1x1xf32>
    %cst_16 = arith.constant 6.51041686E-4 : f32
    %34 = arith.mulf %33, %cst_16 : f32
    %35 = arith.mulf %28, %28 : f32
    %36 = arith.subf %34, %35 : f32
    %cst_17 = arith.constant 0.000000e+00 : f32
    %37 = arith.maximumf %36, %cst_17 : f32
    %cst_18 = arith.constant 9.99999993E-9 : f32
    %38 = arith.addf %37, %cst_18 : f32
    %39 = math.rsqrt %38 : f32
    %40 = vector.broadcast %39 : f32 to vector<32x1xf32>
    %41 = arith.mulf %1, %40 : vector<32x1xf32>
    %42 = vector.broadcast %28 : f32 to vector<32x1xf32>
    %43 = arith.mulf %42, %41 : vector<32x1xf32>
    %44 = arith.subf %2, %43 : vector<32x1xf32>
    %45 = vector.broadcast %41 : vector<32x1xf32> to vector<32x128xf32>
    %46 = arith.mulf %23, %45 : vector<32x128xf32>
    %47 = vector.broadcast %44 : vector<32x1xf32> to vector<32x128xf32>
    %48 = arith.addf %46, %47 : vector<32x128xf32>
    %cst_19 = arith.constant 0.000000e+00 : f32
    %49 = vector.shape_cast %8 : vector<1x128xi1> to vector<1x128xi1>
    %50 = vector.broadcast %49 : vector<1x128xi1> to vector<32x128xi1>
    %51 = vector.broadcast %cst_19 : f32 to vector<32x128xf32>
    %52 = arith.select %50, %48, %51 : vector<32x128xi1>, vector<32x128xf32>
    %c0_20 = arith.constant 0 : index
    %c0_21 = arith.constant 0 : index
    %53 = vector.load %arg4[%c0_20, %c0_21] : memref<32x3xf32, #tpu.memory_space<vmem>>, vector<32x1xf32>
    %c2_i32 = arith.constant 2 : i32
    %54 = tpu.dynamic_rotate %52 by %c2_i32 dim 1 : vector<32x128xf32>, i32 -> vector<32x128xf32>
    %55 = vector.broadcast %53 : vector<32x1xf32> to vector<32x128xf32>
    %56 = arith.mulf %55, %54 : vector<32x128xf32>
    %57 = vector.broadcast %3 : vector<32x1xf32> to vector<32x128xf32>
    %58 = arith.addf %56, %57 : vector<32x128xf32>
    %c0_22 = arith.constant 0 : index
    %c1_23 = arith.constant 1 : index
    %59 = vector.load %arg4[%c0_22, %c1_23] : memref<32x3xf32, #tpu.memory_space<vmem>>, vector<32x1xf32>
    %60 = vector.broadcast %59 : vector<32x1xf32> to vector<32x128xf32>
    %61 = arith.mulf %60, %52 : vector<32x128xf32>
    %62 = arith.addf %58, %61 : vector<32x128xf32>
    %c0_24 = arith.constant 0 : index
    %c2_25 = arith.constant 2 : index
    %63 = vector.load %arg4[%c0_24, %c2_25] : memref<32x3xf32, #tpu.memory_space<vmem>>, vector<32x1xf32>
    %c126_i32 = arith.constant 126 : i32
    %64 = tpu.dynamic_rotate %52 by %c126_i32 dim 1 : vector<32x128xf32>, i32 -> vector<32x128xf32>
    %65 = vector.broadcast %63 : vector<32x1xf32> to vector<32x128xf32>
    %66 = arith.mulf %65, %64 : vector<32x128xf32>
    %67 = arith.addf %62, %66 : vector<32x128xf32>
    %cst_26 = arith.constant 0.000000e+00 : f32
    %68 = vector.broadcast %cst_26 : f32 to vector<32x128xf32>
    %69 = arith.cmpf ogt, %67, %68 : vector<32x128xf32>
    %70 = vector.broadcast %5 : f32 to vector<32x128xf32>
    %71 = arith.mulf %70, %67 : vector<32x128xf32>
    %72 = arith.select %69, %67, %71 : vector<32x128xi1>, vector<32x128xf32>
    %cst_27 = arith.constant 0.000000e+00 : f32
    %73 = vector.shape_cast %8 : vector<1x128xi1> to vector<1x128xi1>
    %74 = vector.broadcast %73 : vector<1x128xi1> to vector<32x128xi1>
    %75 = vector.broadcast %cst_27 : f32 to vector<32x128xf32>
    %76 = arith.select %74, %72, %75 : vector<32x128xi1>, vector<32x128xf32>
    %77 = vector.shape_cast %76 : vector<32x128xf32> to vector<1x32x128xf32>
    %cst_28 = arith.constant dense<0.000000e+00> : vector<1xf32>
    %78 = vector.multi_reduction <add>, %77, %cst_28 [1, 2] : vector<1x32x128xf32> to vector<1xf32>
    %79 = vector.shape_cast %78 : vector<1xf32> to vector<1x1x1xf32>
    %80 = vector.extract %79[0, 0, 0] : f32 from vector<1x1x1xf32>
    %cst_29 = arith.constant 6.51041686E-4 : f32
    %81 = arith.mulf %80, %cst_29 : f32
    %82 = arith.mulf %76, %76 : vector<32x128xf32>
    %83 = vector.shape_cast %82 : vector<32x128xf32> to vector<1x32x128xf32>
    %cst_30 = arith.constant dense<0.000000e+00> : vector<1xf32>
    %84 = vector.multi_reduction <add>, %83, %cst_30 [1, 2] : vector<1x32x128xf32> to vector<1xf32>
    %85 = vector.shape_cast %84 : vector<1xf32> to vector<1x1x1xf32>
    %86 = vector.extract %85[0, 0, 0] : f32 from vector<1x1x1xf32>
    %cst_31 = arith.constant 6.51041686E-4 : f32
    %87 = arith.mulf %86, %cst_31 : f32
    %88 = arith.mulf %81, %81 : f32
    %89 = arith.subf %87, %88 : f32
    %cst_32 = arith.constant 0.000000e+00 : f32
    %90 = arith.maximumf %89, %cst_32 : f32
    %cst_33 = arith.constant 9.99999993E-9 : f32
    %91 = arith.addf %90, %cst_33 : f32
    %92 = math.rsqrt %91 : f32
    %c0_34 = arith.constant 0 : index
    %c0_35 = arith.constant 0 : index
    %93 = vector.load %arg7[%c0_34, %c0_35] : memref<16x2xf32, #tpu.memory_space<vmem>>, vector<16x1xf32>
    %c0_36 = arith.constant 0 : index
    %c1_37 = arith.constant 1 : index
    %94 = vector.load %arg7[%c0_36, %c1_37] : memref<16x2xf32, #tpu.memory_space<vmem>>, vector<16x1xf32>
    %c0_38 = arith.constant 0 : index
    %c0_39 = arith.constant 0 : index
    %95 = vector.load %arg6[%c0_38, %c0_39] : memref<16x32xf32, #tpu.memory_space<vmem>>, vector<16x32xf32>
    %cst_40 = arith.constant dense<0.000000e+00> : vector<16x128xf32>
    %96 = tpu.matmul %95, %76, %cst_40 {dimension_numbers = #tpu.dot_dimension_numbers<[1], [0], [0], [1], [0, 0, 1, 1], [], []>} : vector<16x32xf32>, vector<32x128xf32>, vector<16x128xf32> -> vector<16x128xf32>
    %97 = vector.broadcast %92 : f32 to vector<16x128xf32>
    %98 = arith.mulf %96, %97 : vector<16x128xf32>
    %99 = arith.mulf %81, %92 : f32
    %100 = vector.broadcast %99 : f32 to vector<16x1xf32>
    %101 = arith.mulf %100, %94 : vector<16x1xf32>
    %102 = arith.subf %93, %101 : vector<16x1xf32>
    %103 = vector.broadcast %102 : vector<16x1xf32> to vector<16x128xf32>
    %104 = arith.addf %98, %103 : vector<16x128xf32>
    %c0_41 = arith.constant 0 : index
    %c0_42 = arith.constant 0 : index
    %c0_43 = arith.constant 0 : index
    %105 = vector.load %arg8[%c0_41, %c0_42, %c0_43] : memref<1x16x128xf32, #tpu.memory_space<vmem>>, vector<1x16x128xf32>
    %106 = vector.shape_cast %105 : vector<1x16x128xf32> to vector<16x128xf32>
    %107 = vector.shape_cast %104 : vector<16x128xf32> to vector<1x16x128xf32>
    tpu.vector_store %arg8[%c0_41, %c0_42, %c0_43], %107 {strides = array<i32>} : memref<1x16x128xf32, #tpu.memory_space<vmem>>, vector<1x16x128xf32>,
    return
  }
  func.func @transform_0(%arg0: i32) -> i32 {
    %c0_i32 = arith.constant 0 : i32
    %c0_i32_0 = arith.constant 0 : i32
    return %c0_i32 : i32
  }
  func.func @transform_1(%arg0: i32) -> (i32, i32, i32) {
    %c0_i32 = arith.constant 0 : i32
    %c0_i32_0 = arith.constant 0 : i32
    %c0_i32_1 = arith.constant 0 : i32
    return %arg0, %c0_i32, %c0_i32_0 : i32, i32, i32
  }
  func.func @transform_2(%arg0: i32) -> (i32, i32) {
    %c0_i32 = arith.constant 0 : i32
    %c0_i32_0 = arith.constant 0 : i32
    %c0_i32_1 = arith.constant 0 : i32
    return %c0_i32, %c0_i32_0 : i32, i32
  }
  func.func @transform_3(%arg0: i32) -> (i32, i32) {
    %c0_i32 = arith.constant 0 : i32
    %c0_i32_0 = arith.constant 0 : i32
    %c0_i32_1 = arith.constant 0 : i32
    return %c0_i32, %c0_i32_0 : i32, i32
  }
  func.func @transform_4(%arg0: i32) -> (i32, i32) {
    %c0_i32 = arith.constant 0 : i32
    %c0_i32_0 = arith.constant 0 : i32
    %c0_i32_1 = arith.constant 0 : i32
    return %c0_i32, %c0_i32_0 : i32, i32
  }
  func.func @transform_5(%arg0: i32) -> (i32, i32) {
    %c0_i32 = arith.constant 0 : i32
    %c0_i32_0 = arith.constant 0 : i32
    %c0_i32_1 = arith.constant 0 : i32
    return %c0_i32, %c0_i32_0 : i32, i32
  }
  func.func @transform_6(%arg0: i32) -> (i32, i32) {
    %c0_i32 = arith.constant 0 : i32
    %c0_i32_0 = arith.constant 0 : i32
    %c0_i32_1 = arith.constant 0 : i32
    return %c0_i32, %c0_i32_0 : i32, i32
  }
  func.func @transform_7(%arg0: i32) -> (i32, i32, i32) {
    %c0_i32 = arith.constant 0 : i32
    %c0_i32_0 = arith.constant 0 : i32
    %c0_i32_1 = arith.constant 0 : i32
    return %arg0, %c0_i32, %c0_i32_0 : i32, i32, i32
  }
}

</mosaic_0001>

<bundles_post_ra>
// kernel: tpu_custom_call.1
= control target key start
LH: loop header
LB: loop body
LE: loop exit
PB: predicated region body
PF: predicated region fallthrough
CT: control target
= control target key end

     0   :  { %12 = vsyncpa [#allocation4], 0  ;;  %s1362_s0 = inlined_call_operand.vmem [shape: f32[2], index: 0, kind: input, shape index: {}]   ;;  %s1363_s1 = inlined_call_operand.vmem [shape: f32[2,16,128], index: 1, kind: input, shape index: {}]   ;;  %s1364_s2 = inlined_call_operand.vmem [shape: f32[32,16], index: 2, kind: input, shape index: {}]   ;;  %s1365_s3 = inlined_call_operand.vmem [shape: f32[32,3], index: 3, kind: input, shape index: {}]   ;;  %s1366_s4 = inlined_call_operand.vmem [shape: f32[32,4], index: 4, kind: input, shape index: {}]   ;;  %s1367_s5 = inlined_call_operand.vmem [shape: f32[16,32], index: 5, kind: input, shape index: {}]   ;;  %s1368_s6 = inlined_call_operand.vmem [shape: f32[16,2], index: 6, kind: input, shape index: {}]   ;;  %s1369_s7 = inlined_call_operand.hbm [shape: f32[2,16,128], index: 7, kind: output, shape index: {}]  }
   0x1   :  { %13 = vsyncpa [#allocation3], 0 }
   0x2   :  { %15 = vsyncpa [#allocation3 + $0x1], 0  ;;  %s1107_s24 = smov 0   ;;  %s1109_s25 = smov 0  }
   0x3   :  { %s1111_s26 = smov 0   ;;  %s1113_s27 = smov 0  }
   0x4 LB: > { %s1128_s28 = sadd.s32 4294967295, %s1053_s27   ;;  %s845_s29 = sadd.s32 4294967294, %s1053_s27   ;;  %s1053_s27 = sphi %s1113_s27, %s1375_s27   ;;  %s1049_s26 = sphi %s1111_s26, %s1374_s26   ;;  %s1045_s25 = sphi %s1109_s25, %s1373_s25   ;;  %s1041_s24 = sphi %s1107_s24, %s1372_s24  }
   0x5   : > { %s1132_s30 = sadd.s32 1, %s1053_s27   ;;  %s180_s8 = sadd.s32 1, %s1049_s26 }
   0x6   : > { %s177_s9 = ssub.s32 %s1053_s27, %s1132_s30  ;;  %p190_p0 = scmp.ne.s32.totalorder %s1049_s26, %s1045_s25 }
   0x7   : > { %p178_p1 = scmp.eq.s32.totalorder %s177_s9, 0  ;;  %p191_p2 = scmp.eq.s32.totalorder %s1128_s28, 1 }
   0x8   : > { %p196_p3 = scmp.ne.s32.totalorder %s1045_s25, %s1041_s24  ;;  %p197_p4 = scmp.eq.s32.totalorder %s845_s29, 1 }
   0x9   : > { %s1143_s10 = scalar_select %p178_p1, %s1049_s26, %s180_s8  }
   0xa   : > { %p1145_p5 = por %p191_p2, %p190_p0  ;;  %p1149_p6 = por %p197_p4, %p196_p3 }
   0xb   : > { %p846_p7 = scmp.ge.s32.totalorder %s1053_s27, 1  ;;  %p204_p8 = scmp.lt.s32.totalorder %s1053_s27, 3 }
   0xc   : > { %p904_p9 = scmp.eq.s32.totalorder %s1128_s28, 0  ;;  %s216_s15 = sshll.u32 %s1362_s0, 4  ;;  %s217_s15 = int_to_ptr.vmem [resolvable:$true] %s216_s15 }
   0xd   : > { %p205_p10 = pnand %p846_p7, %p204_p8  ;;  %s1055_s16 = smov [#allocation2]  }
   0xf   : > { %p896_p11 = pneg %p205_p10  ;;  %252 = sbr.rel (%p205_p10) target bundleno = 1293 (0x50d), region = 48 }
  0x11   : > { %p897_p12 = pnand %p904_p9, %p896_p11 }
  0x13   : > { %899 = dma.vmem_to_smem (!%p897_p12), %s217_s15, 16, %s1055_s16, [#allocation4]  }
  0x14   : > { %1032 = dma.done.wait (%p904_p9), [#allocation4], 16  }
  0x15   : > { %1034 = vsyncadd (%p904_p9), [#allocation4], 4294967280 }
  0x16   : > { %259 = sfence }
  0x17   : > { %p286_p13 = scmp.lt.s32.totalorder %s1128_s28, 1  ;;  %v1163_v0 = vld [vmem:[%s1366_s4] sm:$0xff]  ;;  %v1056_v1 = vmov 0   ;;  %v1170_v2 = vld [vmem:[%s1366_s4 + $0x10] sm:$0xff]  ;;  %vm326_vm0 = vcmask 130048   ;;  %v1188_v7 = vld [vmem:[%s1366_s4 + $0x8] sm:$0xff]  ;;  %v297_v13 = vlaneseq }
  0x18   : > { %951 = vset.pattern.permute.xlu0 %v1056_v1  ;;  %952 = vset.pattern.permute.xlu1 %v1056_v1  ;;  %v302_v5 = vld [vmem:[%s1364_s2] sm:$0xff]  ;;  %v304_v6 = vld [vmem:[%s1364_s2 + $0x10] sm:$0xff]  ;;  %v1193_v8 = vld [vmem:[%s1366_s4 + $0x18] sm:$0xff]  ;;  %s295_s29 = sld [smem:[#allocation2]]  ;;  %s1057_s17 = smov 0.0   ;;  %vm694_vm13 = vcmask 261120  }
  0x19   : > { %s287_s21 = scalar_select %p286_p13, %s1128_s28, 1  ;;  %308 = vperm.xlu0 %951, %v1163_v0   ;;  %318 = vperm.xlu1 %952, %v1170_v2   ;;  %v303_v9 = vld [vmem:[%s1364_s2 + $0x8] sm:$0xff]  ;;  %v305_v10 = vld [vmem:[%s1364_s2 + $0x18] sm:$0xff]  ;;  %v1203_v17 = vand.u32 127, %v297_v13 }
  0x1a   : > { %954 = vset.pattern.permute.xlu2 %v1056_v1 }
  0x1b   : > { %s870_s22 = sshll.u32 %s287_s21, 4  ;;  %vm299_vm2 = vcmp.lt.s32.totalorder %v1203_v17, 48  ;;  %s1059_s21 = smov 1  }
  0x1c   : > { %s290_s8 = scalar_lea.vmem %s1363_s1, %s870_s22  ;;  %s1064_s22 = smov 127  }
  0x1d   : > { %v301_v3 = vld [vmem:[%s290_s8 + $0x8] sm:$0xff]  ;;  %v300_v4 = vld [vmem:[%s290_s8] sm:$0xff] }
  0x1e   : > { %353 = vmatpush.msra.mxu0 %v301_v3  ;;  %872 = vmatpush.msra.mxu2 %v301_v3  ;;  %v372_v16 = vstv %s295_s29 }
  0x20   : > { %354 = vmatpush.msra.mxu0 %v300_v4  ;;  %873 = vmatpush.msra.mxu2 %v300_v4 }
  0x21   : > { %855 = vmatmul.msk.f32.vlgmr.msra.gmra.mxu0 %vm326_vm0, %v302_v5  ;;  %857 = vmatmul.msk.f32.vlgmr.msra.gmra.mxu2 %vm326_vm0, %v304_v6 }
  0x22   : > { %313 = vperm.xlu0 %951, %v1188_v7   ;;  %323 = vperm.xlu1 %952, %v1193_v8  }
  0x29   : > { %856 = vmatmul.msk.f32.gmra.mxu0 %vm326_vm0, %v303_v9  ;;  %858 = vmatmul.msk.f32.gmra.mxu2 %vm326_vm0, %v305_v10 }
  0x8b   : > { %v309_v11 = vpop.permute.xlu0 %308  ;;  %v319_v15 = vpop.permute.xlu1 %318 }
  0x94   : > { %v314_v21 = vpop.permute.xlu0 %313  ;;  %v324_v29 = vpop.permute.xlu1 %323 }
  0x9e   : > { %v356_v12 = vpop.f32.mrf.mxu0 }
  0x9f   : > { %v357_v14 = vadd.f32 %v356_v12, %v309_v11  ;;  %v1058_v11 = vmov 1  }
  0xa0   : > { %953 = vset.pattern.permute.xlu1 %v1058_v11 }
  0xa1   : > { %v373_v19 = vmul.f32 %v372_v16, %v357_v14  ;;  %vm368_vm1 = vcmp.gt.f32.partialorder %v357_v14, 0.0 }
  0xa3   : > { %v377_v24 = vsel %vm368_vm1, %v357_v14, %v373_v19 }
  0xa4   : > { %v362_v18 = vpop.f32.mrf.mxu2  ;;  %v1208_v28 = vsel %vm299_vm2, %v377_v24, 0.0  ;;  %v1060_v24 = vmov 3  }
  0xa5   : > { %v363_v20 = vadd.f32 %v362_v18, %v319_v15  ;;  %v400_v42 = vmul.f32 %v1208_v28, %v1208_v28 }
  0xa6   : > { %v359_v22 = vpop.f32.mrf.mxu0 }
  0xa7   : > { %v360_v23 = vadd.f32 %v359_v22, %v314_v21  ;;  %v375_v25 = vmul.f32 %v372_v16, %v363_v20  ;;  %vm370_vm4 = vcmp.gt.f32.partialorder %v363_v20, 0.0 }
  0xa9   : > { %vm369_vm3 = vcmp.gt.f32.partialorder %v360_v23, 0.0  ;;  %v374_v26 = vmul.f32 %v372_v16, %v360_v23  ;;  %v379_v32 = vsel %vm370_vm4, %v363_v20, %v375_v25  ;;  %v515_v25 = vld [vmem:[%s1365_s3] sm:$0xff] }
  0xaa   : > { %v1218_v36 = vsel %vm299_vm2, %v379_v32, 0.0 }
  0xab   : > { %v378_v27 = vsel %vm369_vm3, %v360_v23, %v374_v26  ;;  %v402_v44 = vmul.f32 %v1218_v36, %v1218_v36  ;;  %v516_v23 = vld [vmem:[%s1365_s3 + $0x8] sm:$0xff]  ;;  %v1250_v26 = vld [vmem:[%s1365_s3 + $0x18] sm:$0xff] }
  0xac   : > { %v1212_v30 = vsel %vm299_vm2, %v378_v27, 0.0  ;;  %v365_v31 = vpop.f32.mrf.mxu2  ;;  %v1256_v27 = vld [vmem:[%s1365_s3 + $0x10] sm:$0xff] }
  0xad   : > { %v366_v33 = vadd.f32 %v365_v31, %v324_v29  ;;  %v387_v34 = vadd.f32 %v1212_v30, %v1208_v28  ;;  %v401_v39 = vmul.f32 %v1212_v30, %v1212_v30  ;;  %v1061_v29 = vmov 2  }
  0xaf   : > { %vm371_vm5 = vcmp.gt.f32.partialorder %v366_v33, 0.0  ;;  %v376_v35 = vmul.f32 %v372_v16, %v366_v33  ;;  %v388_v38 = vadd.f32 %v387_v34, %v1218_v36  ;;  %v404_v43 = vadd.f32 %v401_v39, %v400_v42 }
  0xb1   : > { %v380_v37 = vsel %vm371_vm5, %v366_v33, %v376_v35  ;;  %v405_v46 = vadd.f32 %v404_v43, %v402_v44 }
  0xb2   : > { %v1225_v40 = vsel %vm299_vm2, %v380_v37, 0.0 }
  0xb3   : > { %v389_v41 = vadd.f32 %v388_v38, %v1225_v40  ;;  %v403_v45 = vmul.f32 %v1225_v40, %v1225_v40 }
  0xb5   : > { %390 = vadd.xlane.f32.xlu2 %v389_v41  ;;  %v406_v47 = vadd.f32 %v405_v46, %v403_v45 }
  0xbd   : > { %407 = vadd.xlane.f32.xlu2 %v406_v47 }
 0x128   : > { %v391_v48 = vpop.xlane.xlu2 %390 }
 0x129   : > { %v392_v49 = vrot.slane %v391_v48, 4 }
 0x12b   : > { %v393_v50 = vadd.f32 %v392_v49, %v391_v48 }
 0x12d   : > { %v394_v51 = vrot.slane %v393_v50, 2 }
 0x12f   : > { %v395_v52 = vadd.f32 %v394_v51, %v393_v50 }
 0x130   : > { %v408_v53 = vpop.xlane.xlu2 %407 }
 0x131   : > { %v409_v54 = vrot.slane %v408_v53, 4  ;;  %v396_v55 = vrot.slane %v395_v52, 1 }
 0x133   : > { %v410_v56 = vadd.f32 %v409_v54, %v408_v53  ;;  %v397_v57 = vadd.f32 %v396_v55, %v395_v52 }
 0x135   : > { %v411_v58 = vrot.slane %v410_v56, 2  ;;  %878 = vpush %v397_v57 }
 0x137   : > { %v412_v59 = vadd.f32 %v411_v58, %v410_v56 }
 0x139   : > { %v413_v60 = vrot.slane %v412_v59, 1 }
 0x13b   : > { %v414_v61 = vadd.f32 %v413_v60, %v412_v59 }
 0x13d   : > { %880 = vpush %v414_v61 }
 0x166   : > { %s879_s8 = spop %878 }
 0x167   : > { %s399_s9 = smul.f32 0.0006510417, %s879_s8 }
 0x169   : > { %s417_s13 = smul.f32 %s399_s9, %s399_s9  ;;  %v438_v16 = vstv %s399_s9 }
 0x16e   : > { %s881_s14 = spop %880 }
 0x16f   : > { %s416_s15 = smul.f32 0.0006510417, %s881_s14 }
 0x171   : > { %s418_s16 = ssub.f32 %s416_s15, %s417_s13 }
 0x173   : > { %s419_s18 = smax.f32 %s1057_s17, %s418_s16  ;;  %s1062_s16 = smov 2  }
 0x174   : > { %s420_s19 = sadd.f32 1e-08, %s419_s18  ;;  %s1063_s18 = smov 126  }
 0x176   : > { %v421_v62 = vstv %s420_s19  ;;  %s854_s19 = sld [smem:[#allocation2 + $0x1]] }
 0x177   : > { %968 = vrsqrt.f32 %v421_v62  ;;  %vm428_vm7 = vweird.f32 %v421_v62 }
 0x17d   : > { %v969_v63 = vpop.eup %968 }
 0x17e   : > { %v423_v3 = vmul.f32 %v969_v63, %v421_v62  ;;  %vm429_vm6 = vweird.f32 %v969_v63 }
 0x17f   : > { %vm430_vm8 = vmor %vm428_vm7, %vm429_vm6 }
 0x180   : > { %v424_v4 = vmul.f32 %v969_v63, %v423_v3 }
 0x182   : > { %v425_v5 = vmul.f32 0.5, %v424_v4 }
 0x184   : > { %v426_v6 = vsub.f32 1.5, %v425_v5 }
 0x186   : > { %v427_v9 = vmul.f32 %v969_v63, %v426_v6 }
 0x188   : > { %v431_v10 = vsel %vm430_vm8, %v969_v63, %v427_v9 }
 0x189   : > { %882 = vpush %v431_v10 }
 0x1ba   : > { %s883_s20 = spop %882 }
 0x1bb   : > { %v433_v12 = vstv %s883_s20 }
 0x1bc   : > { %v434_v13 = vmul.f32 %v433_v12, %v1163_v0  ;;  %v435_v14 = vmul.f32 %v433_v12, %v1188_v7  ;;  %v436_v15 = vmul.f32 %v433_v12, %v1170_v2  ;;  %v437_v21 = vmul.f32 %v433_v12, %v1193_v8 }
 0x1be   : > { %v441_v18 = vmul.f32 %v438_v16, %v436_v15  ;;  %v440_v19 = vmul.f32 %v438_v16, %v435_v14  ;;  %v439_v20 = vmul.f32 %v438_v16, %v434_v13  ;;  %v442_v22 = vmul.f32 %v438_v16, %v437_v21 }
 0x1c0   : > { %451 = vrot.lane.b32.xlu2 %v441_v18, %s1059_s21  ;;  %449 = vrot.lane.b32.xlu1 %v440_v19, %s1059_s21 }
 0x1c1   : > { %447 = vrot.lane.b32.xlu0 %v439_v20, %s1059_s21 }
 0x1c8   : > { %465 = vperm.xlu1 %953, %v434_v13   ;;  %529 = vperm.xlu2 %954, %v515_v25  }
 0x1c9   : > { %453 = vrot.lane.b32.xlu0 %v442_v22, %s1059_s21 }
 0x1d0   : > { %475 = vperm.xlu1 %953, %v436_v15   ;;  %539 = vperm.xlu2 %954, %v1256_v27  }
 0x1d1   : > { %534 = vperm.xlu0 %951, %v516_v23  }
 0x1d8   : > { %956 = vset.pattern.permute.xlu1 %v1060_v24  ;;  %957 = vset.pattern.permute.xlu2 %v1060_v24 }
 0x1d9   : > { %955 = vset.pattern.permute.xlu0 %v1058_v11  ;;  %552 = vperm.xlu1 %956, %v1163_v0  }
 0x1da   : > { %470 = vperm.xlu0 %955, %v435_v14   ;;  %556 = vperm.xlu2 %957, %v1188_v7  }
 0x1e1   : > { %958 = vset.pattern.permute.xlu1 %v1058_v11 }
 0x1e2   : > { %480 = vperm.xlu0 %955, %v437_v21   ;;  %576 = vperm.xlu1 %958, %v516_v23  }
 0x1e3   : > { %961 = vset.pattern.permute.xlu2 %v1061_v29 }
 0x1ea   : > { %959 = vset.pattern.permute.xlu1 %v1056_v1  ;;  %572 = vperm.xlu0 %955, %v515_v25  }
 0x1eb   : > { %544 = vperm.xlu1 %959, %v1250_v26  }
 0x1f2   : > { %580 = vperm.xlu0 %955, %v1256_v27  }
 0x1f3   : > { %960 = vset.pattern.permute.xlu1 %v1061_v29 }
 0x1fa   : > { %963 = vset.pattern.permute.xlu0 %v1061_v29 }
 0x1fb   : > { %604 = vperm.xlu0 %963, %v515_v25   ;;  %v631_v25 = vstv %s854_s19 }
 0x21a   : > { %v452_v35 = vpop.permute.xlu2 %451 }
 0x21b   : > { %v461_v38 = vsub.f32 %v1170_v2, %v452_v35 }
 0x232   : > { %v450_v31 = vpop.permute.xlu1 %449 }
 0x233   : > { %v460_v32 = vsub.f32 %v1188_v7, %v450_v31  ;;  %v448_v33 = vpop.permute.xlu0 %447 }
 0x234   : > { %v459_v34 = vsub.f32 %v1163_v0, %v448_v33  ;;  %v530_v0 = vpop.permute.xlu2 %529 }
 0x235   : > { %494 = vperm.xlu2 %961, %v460_v32  }
 0x236   : > { %489 = vperm.xlu1 %960, %v459_v34  }
 0x23a   : > { %v466_v7 = vpop.permute.xlu1 %465 }
 0x23b   : > { %v454_v37 = vpop.permute.xlu0 %453  ;;  %v483_v56 = vmul.f32 %v466_v7, %v1208_v28 }
 0x23c   : > { %v462_v39 = vsub.f32 %v1193_v8, %v454_v37  ;;  %v540_v41 = vpop.permute.xlu2 %539 }
 0x23e   : > { %499 = vperm.xlu1 %960, %v461_v38   ;;  %504 = vperm.xlu2 %961, %v462_v39  }
 0x242   : > { %v476_v42 = vpop.permute.xlu1 %475 }
 0x243   : > { %v535_v43 = vpop.permute.xlu0 %534 }
 0x244   : > { %v557_v44 = vpop.permute.xlu2 %556 }
 0x246   : > { %608 = vperm.xlu1 %960, %v516_v23   ;;  %962 = vset.pattern.permute.xlu2 %v1060_v24 }
 0x247   : > { %560 = vperm.xlu2 %962, %v1170_v2  }
 0x24b   : > { %v553_v45 = vpop.permute.xlu1 %552 }
 0x24c   : > { %v471_v46 = vpop.permute.xlu0 %470 }
 0x24d   : > { %v484_v47 = vmul.f32 %v471_v46, %v1212_v30 }
 0x24e   : > { %964 = vset.pattern.permute.xlu1 %v1058_v11 }
 0x24f   : > { %584 = vperm.xlu1 %964, %v1250_v26   ;;  %564 = vperm.xlu2 %962, %v1193_v8  }
 0x254   : > { %v577_v50 = vpop.permute.xlu1 %576  ;;  %v481_v8 = vpop.permute.xlu0 %480 }
 0x255   : > { %v486_v52 = vmul.f32 %v481_v8, %v1225_v40  ;;  %v485_v40 = vmul.f32 %v476_v42, %v1218_v36 }
 0x257   : > { %965 = vset.pattern.permute.xlu2 %v1061_v29 }
 0x25c   : > { %v573_v28 = vpop.permute.xlu0 %572 }
 0x25d   : > { %v545_v30 = vpop.permute.xlu1 %544 }
 0x264   : > { %v581_v3 = vpop.permute.xlu0 %580 }
 0x26d   : > { %v605_v6 = vpop.permute.xlu0 %604 }
 0x28f   : > { %v495_v48 = vpop.permute.xlu2 %494 }
 0x290   : > { %v508_v49 = vadd.f32 %v495_v48, %v484_v47 }
 0x292   : > { %v512_v2 = vsel %vm299_vm2, %v508_v49, 0.0 }
 0x293   : > { %v588_v51 = vmul.f32 %v577_v50, %v512_v2  ;;  %521 = vrot.lane.b32.xlu1 %v512_v2, %s1062_s16 }
 0x298   : > { %v505_v53 = vpop.permute.xlu2 %504 }
 0x299   : > { %v510_v54 = vadd.f32 %v505_v53, %v486_v52 }
 0x29b   : > { %v1274_v55 = vsel %vm299_vm2, %v510_v54, 0.0 }
 0x29c   : > { %525 = vrot.lane.b32.xlu2 %v1274_v55, %s1062_s16 }
 0x2a1   : > { %v561_v36 = vpop.permute.xlu2 %560 }
 0x2a4   : > { %597 = vrot.lane.b32.xlu2 %v512_v2, %s1063_s18 }
 0x2a8   : > { %v490_v57 = vpop.permute.xlu1 %489 }
 0x2a9   : > { %v507_v58 = vadd.f32 %v490_v57, %v483_v56  ;;  %v565_v4 = vpop.permute.xlu2 %564 }
 0x2ab   : > { %v511_v59 = vsel %vm299_vm2, %v507_v58, 0.0 }
 0x2ac   : > { %519 = vrot.lane.b32.xlu0 %v511_v59, %s1062_s16  ;;  %v587_v31 = vmul.f32 %v573_v28, %v511_v59  ;;  %v693_v28 = vld [vmem:[%s1367_s5 + $0x8] sm:$0xff] }
 0x2b0   : > { %v500_v60 = vpop.permute.xlu1 %499 }
 0x2b1   : > { %v509_v61 = vadd.f32 %v500_v60, %v485_v40 }
 0x2b3   : > { %v513_v62 = vsel %vm299_vm2, %v509_v61, 0.0 }
 0x2b4   : > { %612 = vperm.xlu0 %963, %v1256_v27   ;;  %523 = vrot.lane.b32.xlu1 %v513_v62, %s1062_s16  ;;  %v589_v21 = vmul.f32 %v581_v3, %v513_v62 }
 0x2b5   : > { %599 = vrot.lane.b32.xlu2 %v513_v62, %s1063_s18 }
 0x2b8   : > { %v609_v63 = vpop.permute.xlu1 %608 }
 0x2bc   : > { %595 = vrot.lane.b32.xlu1 %v511_v59, %s1063_s18  ;;  %967 = vset.pattern.permute.xlu0 %v1056_v1 }
 0x2bd   : > { %616 = vperm.xlu2 %965, %v1250_v26  }
 0x2c1   : > { %v585_v5 = vpop.permute.xlu1 %584 }
 0x2c4   : > { %601 = vrot.lane.b32.xlu1 %v1274_v55, %s1063_s18 }
 0x2c5   : > { %966 = vset.pattern.permute.xlu2 %v1056_v1 }
 0x2f6   : > { %v526_v9 = vpop.permute.xlu2 %525 }
 0x2f7   : > { %v550_v34 = vmul.f32 %v545_v30, %v526_v9 }
 0x2fe   : > { %v598_v14 = vpop.permute.xlu2 %597 }
 0x2ff   : > { %v620_v18 = vmul.f32 %v609_v63, %v598_v14 }
 0x305   : > { %v522_v10 = vpop.permute.xlu1 %521 }
 0x306   : > { %v548_v11 = vmul.f32 %v535_v43, %v522_v10 }
 0x308   : > { %v568_v13 = vadd.f32 %v557_v44, %v548_v11  ;;  %v590_v44 = vmul.f32 %v585_v5, %v1274_v55 }
 0x30a   : > { %v592_v15 = vadd.f32 %v588_v51, %v568_v13 }
 0x30c   : > { %v624_v22 = vadd.f32 %v620_v18, %v592_v15 }
 0x30e   : > { %v633_v33 = vmul.f32 %v631_v25, %v624_v22  ;;  %vm628_vm9 = vcmp.gt.f32.partialorder %v624_v22, 0.0 }
 0x30f   : > { %v600_v24 = vpop.permute.xlu2 %599 }
 0x310   : > { %v637_v7 = vsel %vm628_vm9, %v624_v22, %v633_v33 }
 0x311   : > { %v641_v46 = vsel %vm299_vm2, %v637_v7, 0.0 }
 0x312   : > { %v658_v53 = vmul.f32 %v641_v46, %v641_v46 }
 0x31e   : > { %v520_v12 = vpop.permute.xlu0 %519 }
 0x31f   : > { %v547_v19 = vmul.f32 %v530_v0, %v520_v12 }
 0x321   : > { %v567_v26 = vadd.f32 %v553_v45, %v547_v19  ;;  %v617_v45 = vpop.permute.xlu2 %616 }
 0x323   : > { %v591_v37 = vadd.f32 %v587_v31, %v567_v26 }
 0x326   : > { %v524_v16 = vpop.permute.xlu1 %523  ;;  %v613_v1 = vpop.permute.xlu0 %612 }
 0x327   : > { %v549_v20 = vmul.f32 %v540_v41, %v524_v16  ;;  %v621_v29 = vmul.f32 %v613_v1, %v600_v24  ;;  %v570_v41 = vadd.f32 %v565_v4, %v550_v34 }
 0x329   : > { %v569_v23 = vadd.f32 %v561_v36, %v549_v20  ;;  %v594_v49 = vadd.f32 %v590_v44, %v570_v41  ;;  %v692_v36 = vld [vmem:[%s1367_s5] sm:$0xff] }
 0x32b   : > { %v593_v27 = vadd.f32 %v589_v21, %v569_v23 }
 0x32d   : > { %v625_v32 = vadd.f32 %v621_v29, %v593_v27  ;;  %v691_v29 = vld [vmem:[%s1368_s6 + $0x8] sm:$0xff] }
 0x32e   : > { %v596_v35 = vpop.permute.xlu1 %595 }
 0x32f   : > { %v619_v38 = vmul.f32 %v605_v6, %v596_v35  ;;  %v634_v39 = vmul.f32 %v631_v25, %v625_v32  ;;  %vm629_vm10 = vcmp.gt.f32.partialorder %v625_v32, 0.0 }
 0x331   : > { %v623_v0 = vadd.f32 %v619_v38, %v591_v37  ;;  %v638_v43 = vsel %vm629_vm10, %v625_v32, %v634_v39 }
 0x332   : > { %v642_v50 = vsel %vm299_vm2, %v638_v43, 0.0 }
 0x333   : > { %vm627_vm11 = vcmp.gt.f32.partialorder %v623_v0, 0.0  ;;  %v632_v42 = vmul.f32 %v631_v25, %v623_v0  ;;  %v659_v30 = vmul.f32 %v642_v50, %v642_v50 }
 0x335   : > { %v636_v47 = vsel %vm627_vm11, %v623_v0, %v632_v42 }
 0x336   : > { %v602_v48 = vpop.permute.xlu1 %601  ;;  %v640_v2 = vsel %vm299_vm2, %v636_v47, 0.0 }
 0x337   : > { %v622_v51 = vmul.f32 %v617_v45, %v602_v48  ;;  %v644_v8 = vadd.f32 %v641_v46, %v640_v2  ;;  %v657_v52 = vmul.f32 %v640_v2, %v640_v2 }
 0x339   : > { %v626_v54 = vadd.f32 %v622_v51, %v594_v49  ;;  %v645_v55 = vadd.f32 %v644_v8, %v642_v50  ;;  %v661_v56 = vadd.f32 %v658_v53, %v657_v52 }
 0x33b   : > { %vm630_vm12 = vcmp.gt.f32.partialorder %v626_v54, 0.0  ;;  %v635_v57 = vmul.f32 %v631_v25, %v626_v54  ;;  %v662_v58 = vadd.f32 %v661_v56, %v659_v30  ;;  %v690_v25 = vld [vmem:[%s1368_s6] sm:$0xff] }
 0x33d   : > { %v639_v59 = vsel %vm630_vm12, %v626_v54, %v635_v57 }
 0x33e   : > { %859 = vmatpush.msk.msra.mxu1 %vm299_vm2, %v639_v59  ;;  %874 = vmatpush.msk.msra.mxu3 %vm299_vm2, %v639_v59  ;;  %v643_v40 = vsel %vm299_vm2, %v639_v59, 0.0 }
 0x33f   : > { %v646_v60 = vadd.f32 %v645_v55, %v643_v40  ;;  %v660_v61 = vmul.f32 %v643_v40, %v643_v40 }
 0x340   : > { %860 = vmatpush.msk.msra.mxu1 %vm299_vm2, %v638_v43  ;;  %875 = vmatpush.msk.msra.mxu3 %vm299_vm2, %v638_v43 }
 0x341   : > { %647 = vadd.xlane.f32.xlu0 %v646_v60  ;;  %v663_v62 = vadd.f32 %v662_v58, %v660_v61 }
 0x342   : > { %861 = vmatpush.msk.msra.mxu1 %vm299_vm2, %v637_v7  ;;  %876 = vmatpush.msk.msra.mxu3 %vm299_vm2, %v637_v7 }
 0x343   : > { %664 = vadd.xlane.f32.xlu1 %v663_v62 }
 0x344   : > { %862 = vmatpush.msk.msra.mxu1 %vm299_vm2, %v636_v47  ;;  %877 = vmatpush.msk.msra.mxu3 %vm299_vm2, %v636_v47 }
 0x345   : > { %864 = vmatmul.msk.f32.vlgmr.msra.gmra.mxu3 %vm694_vm13, %v693_v28  ;;  %863 = vmatmul.msk.f32.vlgmr.msra.gmra.mxu1 %vm694_vm13, %v692_v36 }
 0x3b4   : > { %v648_v63 = vpop.xlane.xlu0 %647 }
 0x3b5   : > { %v649_v3 = vrot.slane %v648_v63, 4 }
 0x3b6   : > { %v665_v4 = vpop.xlane.xlu1 %664 }
 0x3b7   : > { %v650_v5 = vadd.f32 %v649_v3, %v648_v63  ;;  %v666_v6 = vrot.slane %v665_v4, 4 }
 0x3b9   : > { %v651_v9 = vrot.slane %v650_v5, 2  ;;  %v667_v10 = vadd.f32 %v666_v6, %v665_v4 }
 0x3bb   : > { %v652_v17 = vadd.f32 %v651_v9, %v650_v5  ;;  %v668_v11 = vrot.slane %v667_v10, 2 }
 0x3bd   : > { %v669_v12 = vadd.f32 %v668_v11, %v667_v10  ;;  %v653_v13 = vrot.slane %v652_v17, 1 }
 0x3bf   : > { %v654_v14 = vadd.f32 %v653_v13, %v652_v17  ;;  %v670_v15 = vrot.slane %v669_v12, 1 }
 0x3c1   : > { %884 = vpush %v654_v14  ;;  %v671_v16 = vadd.f32 %v670_v15, %v669_v12 }
 0x3c2   : > { %v718_v38 = vpop.f32.mrf.mxu1 }
 0x3c3   : > { %886 = vpush %v671_v16 }
 0x3c8   : > { %v721_v41 = vpop.f32.mrf.mxu3 }
 0x3f2   : > { %s885_s29 = spop %884 }
 0x3f3   : > { %s656_s8 = smul.f32 0.0006510417, %s885_s29  ;;  %s1007_s29 = scalar_lea.hbm %s1369_s7, 32 }
 0x3f4   : > { %s887_s9 = spop %886 }
 0x3f5   : > { %s674_s13 = smul.f32 %s656_s8, %s656_s8 }
 0x3f6   : > { %s673_s14 = smul.f32 0.0006510417, %s887_s9  ;;  %s283_s9 = sand.u32 1, %s1045_s25  }
 0x3f8   : > { %s675_s15 = ssub.f32 %s673_s14, %s674_s13  ;;  %s871_s13 = sshll.u32 %s1128_s28, 4 }
 0x3fa   : > { %s676_s16 = smax.f32 %s1057_s17, %s675_s15 }
 0x3fb   : > { %s677_s18 = sadd.f32 1e-08, %s676_s16  ;;  %s767_s16 = scalar_lea.hbm %s1369_s7, %s871_s13 }
 0x3fc   : > { %s770_s21 = sshll.u32 %s767_s16, 4  ;;  %s771_s21 = int_to_ptr.hbm [resolvable:$true] %s770_s21 }
 0x3fd   : > { %v678_v18 = vstv %s677_s18  ;;  %s1001_s28 = sshra.s32 %s771_s21, 4  ;;  %s1002_s28 = int_to_ptr.hbm [resolvable:$true] %s1001_s28 }
 0x3fe   : > { %970 = vrsqrt.f32 %v678_v18  ;;  %vm685_vm15 = vweird.f32 %v678_v18  ;;  %p1008_p3 = scmp.lt.s32.totalorder %s1002_s28, %s1369_s7 }
 0x404   : > { %v971_v19 = vpop.eup %970 }
 0x405   : > { %v680_v20 = vmul.f32 %v971_v19, %v678_v18  ;;  %vm686_vm14 = vweird.f32 %v971_v19 }
 0x406   : > { %vm687_vm0 = vmor %vm685_vm15, %vm686_vm14 }
 0x407   : > { %v681_v1 = vmul.f32 %v971_v19, %v680_v20 }
 0x409   : > { %v682_v21 = vmul.f32 0.5, %v681_v1 }
 0x40b   : > { %v683_v22 = vsub.f32 1.5, %v682_v21 }
 0x40d   : > { %v684_v23 = vmul.f32 %v971_v19, %v683_v22 }
 0x40f   : > { %v688_v24 = vsel %vm687_vm0, %v971_v19, %v684_v23 }
 0x410   : > { %888 = vpush %v688_v24 }
 0x441   : > { %s1320_s19 = spop %888 }
 0x442   : > { %s727_s17 = smul.f32 %s1320_s19, %s656_s8  ;;  %v724_v37 = vstv %s1320_s19  ;;  %s851_s8 = sshll.u32 %s283_s9, 4 }
 0x443   : > { %v725_v39 = vmul.f32 %v724_v37, %v718_v38  ;;  %s285_s18 = scalar_lea.vmem [#allocation5], %s851_s8  ;;  %v726_v42 = vmul.f32 %v724_v37, %v721_v41  ;;  %s756_s19 = scalar_lea.sflag [#allocation3], %s283_s9 }
 0x444   : > { %v728_v26 = vstv %s727_s17  ;;  %s768_s20 = sshll.u32 %s285_s18, 4  ;;  %s1003_s17 = scalar_lea.hbm %s1002_s28, 16  ;;  %s769_s20 = int_to_ptr.vmem [resolvable:$true] %s768_s20 }
 0x445   : > { %v729_v27 = vmul.f32 %v728_v26, %v690_v25  ;;  %v730_v31 = vmul.f32 %v728_v26, %v691_v29  ;;  %p1004_p0 = scmp.ne.s32.totalorder %s1002_s28, %s1003_s17  ;;  %p1009_p4 = scmp.lt.s32.totalorder %s1007_s29, %s1003_s17 }
 0x447   : > { %733 = vrot.lane.b32.xlu2 %v729_v27, %s1064_s22  ;;  %p1005_p1 = pnand %p1004_p0, %p1145_p5  ;;  %p1010_p7 = por %p1009_p4, %p1008_p3 }
 0x449   : > { %p1006_p2 = pneg %p1005_p1 }
 0x44b   : > { %p1011_p8 = pnand %p1010_p7, %p1006_p2 }
 0x44f   : > { %735 = vrot.lane.b32.xlu2 %v730_v31, %s1064_s22 }
 0x4a1   : > { %v734_v32 = vpop.permute.xlu2 %733 }
 0x4a2   : > { %v739_v33 = vsub.f32 %v690_v25, %v734_v32 }
 0x4a4   : > { %743 = vperm.xlu2 %966, %v739_v33  }
 0x4a9   : > { %v736_v34 = vpop.permute.xlu2 %735 }
 0x4aa   : > { %v740_v35 = vsub.f32 %v691_v29, %v736_v34 }
 0x4ac   : > { %748 = vperm.xlu2 %966, %v740_v35  }
 0x4fe   : > { %v744_v0 = vpop.permute.xlu2 %743 }
 0x4ff   : > { %v751_v7 = vadd.f32 %v744_v0, %v725_v39 }
 0x501   : > { %753 = vst [vmem:[%s285_s18] sm:$0xff] %v751_v7 }
 0x506   : > { %v749_v43 = vpop.permute.xlu2 %748 }
 0x507   : > { %v752_v44 = vadd.f32 %v749_v43, %v726_v42 }
 0x509   : > { %754 = vst [vmem:[%s285_s18 + $0x8] sm:$0xff] %v752_v44 }
 0x50a   : > { %1014 = shalt.err (!%p1011_p8)
}
 0x50b   : > { %s1065_s9 = smov 128   ;;  %s1066_s14 = smov 8  }
 0x50c   : > { %894 = dma.vmem_to_hbm [thread:$0]  (%p1145_p5), %s769_s20, 256, %s771_s21, %s756_s19, %s1065_s9, %s1065_s9, %s1066_s14  }
 0x50d PF: > { %p906_p9 = scmp.ge.s32.totalorder %s1053_s27, 2  ;;  %s785_s15 = sand.u32 1, %s1041_s24  }
 0x50e   : > { %s786_s16 = scalar_lea.sflag [#allocation3], %s785_s15 }
 0x50f   : > { %p901_p10 = pnand %p906_p9, %p1149_p6 }
 0x511   : > { %p902_p11 = pneg %p901_p10 }
 0x513   : > { %1036 = dma.done.wait (%p902_p11), %s786_s16, 256  }
 0x514   : > { %1038 = vsyncadd (%p902_p11), %s786_s16, 4294967040  ;;  %p18_p12 = scmp.ge.s32.totalorder %s1132_s30, 4   ;;  %s1372_s24 = smov %s1045_s25 }
 0x515   : > { %s1373_s25 = smov %s1049_s26  ;;  %s1374_s26 = smov %s1143_s10 }
 0x516   : > { %s1375_s27 = smov %s1132_s30  ;;  %20 = sbr.rel (!%p18_p12) target bundleno = 4 (0x4), region = 88 }
 0x51b   :  { %792 = vsyncpa [#allocation3], 1 }
 0x51c   :  { %794 = vsyncpa [#allocation3 + $0x1], 1 }
 0x51d   :  { %795 = vsyncpa [#allocation4], 1 }
 0x51e   :  { %797 = vsyncpa [#allocation4 + $0x1], 1 }

</bundles_post_ra>
